<compile_context>
chip_gen: v7x
topology: tpu7x:2x2x1
jax: 0.10.0
libtpu: 0.0.40
codegen_flags: <defaults>
</compile_context>

<pallas_src>
import numpy as np
import jax
import jax.numpy as jnp
from jax import lax
from jax.experimental import pallas as pl
from jax.experimental.pallas import tpu as pltpu

_TILE_B_MAX = 4096  # batch-tile rows; x dbl-buffer at 4096 f32 is ~2 MiB -> safe on v7x too


def _round_up(n, m):
    return ((n + m - 1) // m) * m


def _mlp_kernel(x_ref, w1_ref, b1_ref, w2_ref, b2_ref, w3_ref, b3_ref, o_ref):
    """Fused 3-layer MLP on a (TILE_B, features) activation tile.

    Weights are (out_dim, in_dim) (PyTorch layout), biases (1, out_dim) rows.
    Each layer contracts the shared feature axis: h = x . W^T + b, with f32
    accumulation on the MXU and the f32 bias/ReLU epilogue on the VPU.
    """
    contract = (((1,), (1,)), ((), ()))  # lhs feature axis with rhs `in` axis

    x = x_ref[...]                                             # (tile_b, 64)
    # Layer 1: Linear(64 -> 32) + ReLU
    h = lax.dot_general(x, w1_ref[...], contract,
                        preferred_element_type=jnp.float32)    # (tile_b, 32)
    h = jnp.maximum(h + b1_ref[...], 0.0)
    # Layer 2: Linear(32 -> 32) + ReLU
    h = lax.dot_general(h.astype(w2_ref.dtype), w2_ref[...], contract,
                        preferred_element_type=jnp.float32)    # (tile_b, 32)
    h = jnp.maximum(h + b2_ref[...], 0.0)
    # Layer 3: Linear(32 -> 8), transfer is None
    h = lax.dot_general(h.astype(w3_ref.dtype), w3_ref[...], contract,
                        preferred_element_type=jnp.float32)    # (tile_b, 8)
    o_ref[...] = (h + b3_ref[...]).astype(o_ref.dtype)


def ann_forward(x, params, input_shape, output_shape):
    """Forward pass of _ANN: flatten -> fused MLP Pallas kernel -> reshape."""
    (w1, b1), (w2, b2), (w3, b3) = params
    in_dim = int(np.prod(input_shape))
    out_dim = int(np.prod(output_shape))

    # Natural layout: no transpose, no pad, no input copy.
    x2d = x.reshape(-1, in_dim)
    if not jnp.issubdtype(x2d.dtype, jnp.floating):
        x2d = x2d.astype(jnp.float32)
    act_dtype = x2d.dtype
    batch = x2d.shape[0]

    # Batch-tile selection:
    #  * small batch: one full-extent block (exempt from the sublane-8 rule).
    #  * otherwise: big tiles (amortize ~0.35us/step), multiple of 128 so the
    #    sublane constraint holds, clamped so the grid keeps >= 4 steps.
    if batch < 512:
        tile_b = batch
    else:
        tile_b = min(_TILE_B_MAX, _round_up(pl.cdiv(batch, 4), 128))
    grid = (pl.cdiv(batch, tile_b),)

    # Resident weights (PyTorch (out, in) layout) follow the activation dtype;
    # biases stay f32 rows and are added after f32 accumulation.
    w1c = w1.astype(act_dtype)
    w2c = w2.astype(act_dtype)
    w3c = w3.astype(act_dtype)
    b1c = b1.reshape(1, -1).astype(jnp.float32)
    b2c = b2.reshape(1, -1).astype(jnp.float32)
    b3c = b3.reshape(1, -1).astype(jnp.float32)

    resident = lambda arr: pl.BlockSpec(arr.shape, lambda i: (0, 0))

    act_bytes = jnp.dtype(act_dtype).itemsize
    weight_bytes = (sum(int(np.prod(w.shape)) * act_bytes for w in (w1c, w2c, w3c))
                    + sum(int(np.prod(b.shape)) * 4 for b in (b1c, b2c, b3c)))
    flops = 2 * batch * sum(int(w.shape[0]) * int(w.shape[1])
                            for w in (w1c, w2c, w3c))
    bytes_accessed = batch * (in_dim + out_dim) * act_bytes + weight_bytes

    out2d = pl.pallas_call(
        _mlp_kernel,
        out_shape=jax.ShapeDtypeStruct((batch, out_dim), act_dtype),
        grid=grid,
        in_specs=[
            pl.BlockSpec((tile_b, in_dim), lambda i: (i, 0)),
            resident(w1c), resident(b1c),
            resident(w2c), resident(b2c),
            resident(w3c), resident(b3c),
        ],
        out_specs=pl.BlockSpec((tile_b, out_dim), lambda i: (i, 0)),
        compiler_params=pltpu.CompilerParams(
            dimension_semantics=("parallel",),
            vmem_limit_bytes=32 * 1024 * 1024,   # safe on v7x's 64 MiB/TC as well
        ),
        cost_estimate=pl.CostEstimate(
            flops=flops, transcendentals=0, bytes_accessed=bytes_accessed),
    )(x2d, w1c, b1c, w2c, b2c, w3c, b3c)

    return out2d.reshape((-1,) + tuple(output_shape))


def init_params(key, dims):
    """torch.nn.Linear-style init: W ~ U(-1/sqrt(in), 1/sqrt(in)), shape (out, in)."""
    params = []
    for in_dim, out_dim in zip(dims[:-1], dims[1:]):
        key, kw, kb = jax.random.split(key, 3)
        bound = 1.0 / np.sqrt(in_dim)
        w = jax.random.uniform(kw, (out_dim, in_dim), jnp.float32, -bound, bound)
        b = jax.random.uniform(kb, (out_dim,), jnp.float32, -bound, bound)
        params.append((w, b))
    return params


def reference_forward(x, params, input_shape, output_shape):
    """Pure-JAX reference mirroring the PyTorch module (x @ W.T + b)."""
    in_dim = int(np.prod(input_shape))
    h = x.reshape(-1, in_dim).astype(jnp.float32)
    (w1, b1), (w2, b2), (w3, b3) = params
    h = jnp.maximum(h @ w1.T + b1, 0.0)
    h = jnp.maximum(h @ w2.T + b2, 0.0)
    h = h @ w3.T + b3
    return h.reshape((-1,) + tuple(output_shape))


if __name__ == "__main__":
    input_shape = (4, 16)      # prod = 64
    output_shape = (8,)        # prod = 8
    hidden_dims = [32, 32]
    dims = [int(np.prod(input_shape))] + hidden_dims + [int(np.prod(output_shape))]

    key = jax.random.PRNGKey(0)
    key, kx, kx2 = jax.random.split(key, 3)
    params = init_params(key, dims)

    # Small-batch path (single full-extent block), f32 streaming.
    x = jax.random.normal(kx, (2,) + input_shape, jnp.float32)  # batch=2
    ref = reference_forward(x, params, input_shape, output_shape)
    out = jax.block_until_ready(ann_forward(x, params, input_shape, output_shape))
    assert out.shape == (2,) + tuple(output_shape), out.shape
    np.testing.assert_allclose(np.asarray(out), np.asarray(ref),
                               rtol=1e-3, atol=1e-5)

    # Tiled path with a ragged last block (batch=600 -> tile 256, grid 3):
    # exercises Pallas boundary read-padding / write-clipping.
    xb = jax.random.normal(kx2, (600,) + input_shape, jnp.float32)
    refb = reference_forward(xb, params, input_shape, output_shape)
    outb = jax.block_until_ready(ann_forward(xb, params, input_shape, output_shape))
    np.testing.assert_allclose(np.asarray(outb), np.asarray(refb),
                               rtol=1e-3, atol=1e-5)

    # Opt-in bf16 streaming: caller already holds bf16 activations (a wrapper
    # cast would *add* HBM traffic, so it is intentionally not done here).
    out_bf16 = jax.block_until_ready(
        ann_forward(x.astype(jnp.bfloat16), params, input_shape, output_shape))
    np.testing.assert_allclose(np.asarray(out_bf16).astype(np.float32),
                               np.asarray(ref), rtol=5e-2, atol=5e-2)

    print("KERNEL_OK")
</pallas_src>

<mosaic_0001>
module attributes {stable_mosaic.version = 11 : i64} {
  func.func @_mlp_kernel(%arg0: i32, %arg1: memref<2x64xf32, #tpu.memory_space<vmem>>, %arg2: memref<32x64xf32, #tpu.memory_space<vmem>>, %arg3: memref<1x32xf32, #tpu.memory_space<vmem>>, %arg4: memref<32x32xf32, #tpu.memory_space<vmem>>, %arg5: memref<1x32xf32, #tpu.memory_space<vmem>>, %arg6: memref<8x32xf32, #tpu.memory_space<vmem>>, %arg7: memref<1x8xf32, #tpu.memory_space<vmem>>, %arg8: memref<2x8xf32, #tpu.memory_space<vmem>>) attributes {dimension_semantics = [#tpu.dimension_semantics<parallel>], iteration_bounds = array<i64: 1>, scalar_prefetch = 0 : i64, scratch_operands = 0 : i64, tpu.core_type = #tpu.core_type<tc>, window_params = [{transform_indices = @transform_0, window_bounds = array<i64: 2, 64>}, {pipeline_mode = #tpu.pipeline_mode<synchronous>, transform_indices = @transform_1, window_bounds = array<i64: 32, 64>}, {pipeline_mode = #tpu.pipeline_mode<synchronous>, transform_indices = @transform_2, window_bounds = array<i64: 1, 32>}, {pipeline_mode = #tpu.pipeline_mode<synchronous>, transform_indices = @transform_3, window_bounds = array<i64: 32, 32>}, {pipeline_mode = #tpu.pipeline_mode<synchronous>, transform_indices = @transform_4, window_bounds = array<i64: 1, 32>}, {pipeline_mode = #tpu.pipeline_mode<synchronous>, transform_indices = @transform_5, window_bounds = array<i64: 8, 32>}, {pipeline_mode = #tpu.pipeline_mode<synchronous>, transform_indices = @transform_6, window_bounds = array<i64: 1, 8>}, {transform_indices = @transform_7, window_bounds = array<i64: 2, 8>}]} {
    %c0 = arith.constant 0 : index
    %c0_0 = arith.constant 0 : index
    %0 = vector.load %arg1[%c0, %c0_0] : memref<2x64xf32, #tpu.memory_space<vmem>>, vector<2x64xf32>
    %c0_1 = arith.constant 0 : index
    %c0_2 = arith.constant 0 : index
    %1 = vector.load %arg2[%c0_1, %c0_2] : memref<32x64xf32, #tpu.memory_space<vmem>>, vector<32x64xf32>
    %cst = arith.constant dense<0.000000e+00> : vector<2x32xf32>
    %2 = tpu.matmul %0, %1, %cst {dimension_numbers = #tpu.dot_dimension_numbers<[1], [1], [0], [0], [0, 0, 1, 0], [], []>} : vector<2x64xf32>, vector<32x64xf32>, vector<2x32xf32> -> vector<2x32xf32>
    %c0_3 = arith.constant 0 : index
    %c0_4 = arith.constant 0 : index
    %3 = vector.load %arg3[%c0_3, %c0_4] : memref<1x32xf32, #tpu.memory_space<vmem>>, vector<1x32xf32>
    %4 = vector.broadcast %3 : vector<1x32xf32> to vector<2x32xf32>
    %5 = arith.addf %2, %4 : vector<2x32xf32>
    %cst_5 = arith.constant 0.000000e+00 : f32
    %6 = vector.broadcast %cst_5 : f32 to vector<2x32xf32>
    %7 = arith.maximumf %5, %6 : vector<2x32xf32>
    %c0_6 = arith.constant 0 : index
    %c0_7 = arith.constant 0 : index
    %8 = vector.load %arg4[%c0_6, %c0_7] : memref<32x32xf32, #tpu.memory_space<vmem>>, vector<32x32xf32>
    %cst_8 = arith.constant dense<0.000000e+00> : vector<2x32xf32>
    %9 = tpu.matmul %7, %8, %cst_8 {dimension_numbers = #tpu.dot_dimension_numbers<[1], [1], [0], [0], [0, 0, 1, 0], [], []>} : vector<2x32xf32>, vector<32x32xf32>, vector<2x32xf32> -> vector<2x32xf32>
    %c0_9 = arith.constant 0 : index
    %c0_10 = arith.constant 0 : index
    %10 = vector.load %arg5[%c0_9, %c0_10] : memref<1x32xf32, #tpu.memory_space<vmem>>, vector<1x32xf32>
    %11 = vector.broadcast %10 : vector<1x32xf32> to vector<2x32xf32>
    %12 = arith.addf %9, %11 : vector<2x32xf32>
    %cst_11 = arith.constant 0.000000e+00 : f32
    %13 = vector.broadcast %cst_11 : f32 to vector<2x32xf32>
    %14 = arith.maximumf %12, %13 : vector<2x32xf32>
    %c0_12 = arith.constant 0 : index
    %c0_13 = arith.constant 0 : index
    %15 = vector.load %arg6[%c0_12, %c0_13] : memref<8x32xf32, #tpu.memory_space<vmem>>, vector<8x32xf32>
    %cst_14 = arith.constant dense<0.000000e+00> : vector<2x8xf32>
    %16 = tpu.matmul %14, %15, %cst_14 {dimension_numbers = #tpu.dot_dimension_numbers<[1], [1], [0], [0], [0, 0, 1, 0], [], []>} : vector<2x32xf32>, vector<8x32xf32>, vector<2x8xf32> -> vector<2x8xf32>
    %c0_15 = arith.constant 0 : index
    %c0_16 = arith.constant 0 : index
    %17 = vector.load %arg7[%c0_15, %c0_16] : memref<1x8xf32, #tpu.memory_space<vmem>>, vector<1x8xf32>
    %18 = vector.broadcast %17 : vector<1x8xf32> to vector<2x8xf32>
    %19 = arith.addf %16, %18 : vector<2x8xf32>
    %c0_17 = arith.constant 0 : index
    %c0_18 = arith.constant 0 : index
    %20 = vector.load %arg8[%c0_17, %c0_18] : memref<2x8xf32, #tpu.memory_space<vmem>>, vector<2x8xf32>
    tpu.vector_store %arg8[%c0_17, %c0_18], %19 {strides = array<i32>} : memref<2x8xf32, #tpu.memory_space<vmem>>, vector<2x8xf32>,
    return
  }
  func.func @transform_0(%arg0: i32) -> (i32, i32) {
    %c0_i32 = arith.constant 0 : i32
    %c0_i32_0 = arith.constant 0 : i32
    return %arg0, %c0_i32 : i32, i32
  }
  func.func @transform_1(%arg0: i32) -> (i32, i32) {
    %c0_i32 = arith.constant 0 : i32
    %c0_i32_0 = arith.constant 0 : i32
    %c0_i32_1 = arith.constant 0 : i32
    return %c0_i32, %c0_i32_0 : i32, i32
  }
  func.func @transform_2(%arg0: i32) -> (i32, i32) {
    %c0_i32 = arith.constant 0 : i32
    %c0_i32_0 = arith.constant 0 : i32
    %c0_i32_1 = arith.constant 0 : i32
    return %c0_i32, %c0_i32_0 : i32, i32
  }
  func.func @transform_3(%arg0: i32) -> (i32, i32) {
    %c0_i32 = arith.constant 0 : i32
    %c0_i32_0 = arith.constant 0 : i32
    %c0_i32_1 = arith.constant 0 : i32
    return %c0_i32, %c0_i32_0 : i32, i32
  }
  func.func @transform_4(%arg0: i32) -> (i32, i32) {
    %c0_i32 = arith.constant 0 : i32
    %c0_i32_0 = arith.constant 0 : i32
    %c0_i32_1 = arith.constant 0 : i32
    return %c0_i32, %c0_i32_0 : i32, i32
  }
  func.func @transform_5(%arg0: i32) -> (i32, i32) {
    %c0_i32 = arith.constant 0 : i32
    %c0_i32_0 = arith.constant 0 : i32
    %c0_i32_1 = arith.constant 0 : i32
    return %c0_i32, %c0_i32_0 : i32, i32
  }
  func.func @transform_6(%arg0: i32) -> (i32, i32) {
    %c0_i32 = arith.constant 0 : i32
    %c0_i32_0 = arith.constant 0 : i32
    %c0_i32_1 = arith.constant 0 : i32
    return %c0_i32, %c0_i32_0 : i32, i32
  }
  func.func @transform_7(%arg0: i32) -> (i32, i32) {
    %c0_i32 = arith.constant 0 : i32
    %c0_i32_0 = arith.constant 0 : i32
    return %arg0, %c0_i32 : i32, i32
  }
}

</mosaic_0001>

<bundles_post_ra>
// kernel: tpu_custom_call.1
= control target key start
LH: loop header
LB: loop body
LE: loop exit
PB: predicated region body
PF: predicated region fallthrough
CT: control target
= control target key end

     0   :  { %12 = vsyncpa [#allocation3], 0  ;;  %s672_s0 = inlined_call_operand.hbm [shape: f32[2,64], index: 0, kind: input, shape index: {}]   ;;  %s673_s1 = inlined_call_operand.hbm [shape: f32[32,64], index: 1, kind: input, shape index: {}]   ;;  %s674_s2 = inlined_call_operand.vmem [shape: f32[1,32], index: 2, kind: input, shape index: {}]   ;;  %s675_s3 = inlined_call_operand.hbm [shape: f32[32,32], index: 3, kind: input, shape index: {}]   ;;  %s676_s4 = inlined_call_operand.vmem [shape: f32[1,32], index: 4, kind: input, shape index: {}]   ;;  %s677_s5 = inlined_call_operand.vmem [shape: f32[8,32], index: 5, kind: input, shape index: {}]   ;;  %s678_s6 = inlined_call_operand.vmem [shape: f32[1,8], index: 6, kind: input, shape index: {}]   ;;  %s679_s7 = inlined_call_operand.hbm [shape: f32[2,8], index: 7, kind: output, shape index: {}]  }
   0x1   :  { %13 = vsyncpa [#allocation6], 0 }
   0x2   :  { %14 = vsyncpa [#allocation4], 0  ;;  %s538_s24 = smov [#allocation5]   ;;  %s444_s28 = scalar_lea.hbm %s673_s1, 512 }
   0x3   :  { %s30_s25 = sshll.u32 %s538_s24, 4  ;;  %p445_p0 = scmp.ne.s32.totalorder %s673_s1, %s444_s28  ;;  %s31_s25 = int_to_ptr.vmem [resolvable:$true] %s30_s25 }
   0x4   :  { %p448_p1 = scmp.lt.u32.totalorder %s444_s28, %s673_s1 }
   0x6   :  { %p450_p2 = pnand %p448_p1, %p445_p0 }
   0x8   :  { %453 = shalt.err (!%p450_p2)
}
   0x9   :  { %s454_s10 = scalar_lea.vmem %s31_s25, 512  ;;  %p459_p4 = scmp.lt.s32.totalorder %s31_s25, %s31_s25 }
   0xa   :  { %p455_p3 = scmp.ne.s32.totalorder %s31_s25, %s454_s10  ;;  %p460_p5 = scmp.lt.s32.totalorder %s454_s10, %s454_s10 }
   0xc   :  { %p461_p6 = por %p460_p5, %p459_p4 }
   0xe   :  { %p462_p7 = pnand %p461_p6, %p455_p3 }
  0x10   :  { %465 = shalt.err (!%p462_p7)
}
  0x11   :  { %s539_s11 = smov 128   ;;  %s540_s12 = smov 8  }
  0x12   :  { %36 = dma.hbm_to_vmem [thread:$0]  %s673_s1, 512, %s31_s25, [#allocation6], %s539_s11, %s539_s11, %s540_s12  }
  0x13   :  { %s541_s15 = smov [#allocation2]   ;;  %s542_s17 = smov [#allocation7]  }
  0x14   :  { %s21_s16 = sshll.u32 %s541_s15, 4  ;;  %s44_s18 = sshll.u32 %s542_s17, 4  ;;  %s22_s16 = int_to_ptr.vmem [resolvable:$true] %s21_s16  ;;  %s45_s18 = int_to_ptr.vmem [resolvable:$true] %s44_s18 }
  0x15   :  { %s466_s21 = scalar_lea.hbm %s672_s0, 32 }
  0x16   :  { %p467_p8 = scmp.ne.s32.totalorder %s672_s0, %s466_s21  ;;  %p470_p9 = scmp.lt.u32.totalorder %s466_s21, %s672_s0 }
  0x18   :  { %p472_p10 = pnand %p470_p9, %p467_p8 }
  0x1a   :  { %475 = shalt.err (!%p472_p10)
}
  0x1b   :  { %s476_s1 = scalar_lea.vmem %s22_s16, 32  ;;  %p481_p12 = scmp.lt.s32.totalorder %s22_s16, %s22_s16 }
  0x1c   :  { %p477_p11 = scmp.ne.s32.totalorder %s22_s16, %s476_s1  ;;  %p482_p13 = scmp.lt.s32.totalorder %s476_s1, %s476_s1 }
  0x1e   :  { %p483_p0 = por %p482_p13, %p481_p12 }
  0x20   :  { %p484_p1 = pnand %p483_p0, %p477_p11 }
  0x22   :  { %487 = shalt.err (!%p484_p1)
}
  0x23   :  { %24 = dma.hbm_to_vmem [thread:$0]  %s672_s0, 32, %s22_s16, [#allocation3]  }
  0x24   :  { %s488_s30 = scalar_lea.hbm %s675_s3, 512 }
  0x25   :  { %p489_p2 = scmp.ne.s32.totalorder %s675_s3, %s488_s30  ;;  %p492_p3 = scmp.lt.u32.totalorder %s488_s30, %s675_s3 }
  0x27   :  { %p494_p4 = pnand %p492_p3, %p489_p2 }
  0x29   :  { %497 = shalt.err (!%p494_p4)
}
  0x2a   :  { %s498_s14 = scalar_lea.vmem %s45_s18, 512  ;;  %p503_p6 = scmp.lt.s32.totalorder %s45_s18, %s45_s18 }
  0x2b   :  { %p499_p5 = scmp.ne.s32.totalorder %s45_s18, %s498_s14  ;;  %p504_p7 = scmp.lt.s32.totalorder %s498_s14, %s498_s14 }
  0x2d   :  { %p505_p8 = por %p504_p7, %p503_p6 }
  0x2f   :  { %p506_p9 = pnand %p505_p8, %p499_p5 }
  0x31   :  { %509 = shalt.err (!%p506_p9)
}
  0x32   :  { %50 = dma.hbm_to_vmem [thread:$0]  %s675_s3, 512, %s45_s18, [#allocation6], %s539_s11, %s539_s11, %s540_s12  }
  0x33   :  { %532 = dma.done.wait [#allocation3], 32  }
  0x34   :  { %533 = vsyncadd [#allocation3], 4294967264 }
  0x35   :  { %534 = dma.done.wait [#allocation6], 1024  }
  0x36   :  { %535 = vsyncadd [#allocation6], 4294966272  ;;  %v543_v0 = vmov 0.0|0.0   ;;  %vm544_vm0 = vmmov 0   ;;  %v545_v1 = vmov 0.0   ;;  %vm78_vm1 = vcmask 523264  }
  0x37   :  { %419 = vmatprep.subr.bf16.mxu0 %v543_v0  ;;  %400 = vmatprep.mubr.msk.f32.mxu0 %vm544_vm0, %v545_v1  ;;  %vm176_vm2 = vcmask 261120   ;;  %v67_v2 = vld [vmem:[#allocation5] sm:$0xff]  ;;  %v68_v3 = vld [vmem:[#allocation5 + $0x8] sm:$0xff]  ;;  %vm633_vm3 = vmpackc.low %vm78_vm1, %vm78_vm1  ;;  %s546_s20 = smov [#allocation8]   ;;  %vm347_vm5 = vcmask 58368  }
  0x38   :  { %427 = vmatprep.subr.bf16.mxu1 %v543_v0  ;;  %411 = vmatprep.mubr.msk.f32.mxu1 %vm544_vm0, %v545_v1  ;;  %v420_v5 = vpack.c.bf16 %v68_v3, %v67_v2  ;;  %v165_v6 = vld [vmem:[#allocation7] sm:$0xff]  ;;  %v166_v7 = vld [vmem:[#allocation7 + $0x8] sm:$0xff]  ;;  %vm429_vm4 = vmpackc.low %vm176_vm2, %vm176_vm2  ;;  %s355_s21 = sshll.u32 %s546_s20, 4  ;;  %s356_s21 = int_to_ptr.vmem [resolvable:$true] %s355_s21 }
  0x39   :  { %v428_v8 = vpack.c.bf16 %v166_v7, %v165_v6  ;;  %v69_v9 = vld [vmem:[#allocation5 + $0x10] sm:$0xff]  ;;  %v70_v10 = vld [vmem:[#allocation5 + $0x18] sm:$0xff]  ;;  %p515_p11 = scmp.lt.s32.totalorder %s356_s21, %s356_s21 }
  0x3a   :  { %422 = vmatpush3.bf16.xpose.msk.msra.mxu0 %vm633_vm3, %v420_v5  ;;  %v167_v11 = vld [vmem:[#allocation7 + $0x10] sm:$0xff]  ;;  %v168_v12 = vld [vmem:[#allocation7 + $0x18] sm:$0xff]  ;;  %v424_v13 = vpack.c.bf16 %v70_v10, %v69_v9 }
  0x3b   :  { %423 = vmatprep.subr.bf16.mxu0 %v543_v0  ;;  %430 = vmatpush3.bf16.xpose.msk.msra.mxu1 %vm429_vm4, %v428_v8  ;;  %v432_v14 = vpack.c.bf16 %v168_v12, %v167_v11  ;;  %v66_v15 = vld [vmem:[#allocation2] sm:$0x3]  ;;  %v365_v16 = vld [vmem:[%s674_s2] ss:$0 sm:$0xff] }
  0x3c   :  { %431 = vmatprep.subr.bf16.mxu1 %v543_v0  ;;  %v263_v21 = vld [vmem:[%s677_s5] sm:$0xff]  ;;  %s510_s5 = scalar_lea.vmem %s356_s21, 32 }
  0x3d   :  { %v371_v22 = vld [vmem:[%s676_s4] ss:$0 sm:$0xff]  ;;  %p511_p10 = scmp.ne.s32.totalorder %s356_s21, %s510_s5  ;;  %p516_p12 = scmp.lt.s32.totalorder %s510_s5, %s510_s5 }
  0x3e   :  { %v377_v27 = vld [vmem:[%s678_s6] ss:$0 sm:$0xff] }
  0x3f   :  { %p517_p13 = por %p516_p12, %p515_p11 }
  0x41   :  { %p518_p0 = pnand %p517_p13, %p511_p10 }
  0x42   :  { %426 = vmatpush3.bf16.xpose.msk.msra.mxu0 %vm633_vm3, %v424_v13 }
  0x43   :  { %414 = vmatprep.subr.mxu0 %v545_v1  ;;  %434 = vmatpush3.bf16.xpose.msk.msra.mxu1 %vm429_vm4, %v432_v14 }
  0x49   :  { %401 = vmatmul.mubr.msk.f32.vlgmr.msra.gmra.mrb[0].mxu0 %vm78_vm1, %v66_v15 }
  0x4a   :  { %416 = vmatprep.mubr.msk.f32.mxu0 %vm544_vm0, %v545_v1  ;;  %415 = vmatpush3.xpose.msk.msra.mxu0 %vm176_vm2, %v263_v21 }
 0x11c   :  { %v160_v17 = vpop.f32.mrb[0].mxu0 }
 0x11d   :  { %v161_v18 = vadd.f32 %v365_v16, %v160_v17  ;;  %v402_v19 = vpop.f32.mrb[1].mxu0 }
 0x11f   :  { %v164_v20 = vmax.f32 %v161_v18, 0.0 }
 0x121   :  { %412 = vmatmul.mubr.msk.f32.vlgmr.msra.gmra.mrb[0].mxu1 %vm176_vm2, %v164_v20 }
 0x1f4   :  { %v258_v23 = vpop.f32.mrb[0].mxu1 }
 0x1f5   :  { %v259_v24 = vadd.f32 %v371_v22, %v258_v23  ;;  %v413_v25 = vpop.f32.mrb[1].mxu1 }
 0x1f7   :  { %v262_v26 = vmax.f32 %v259_v24, 0.0 }
 0x1f9   :  { %417 = vmatmul.mubr.msk.f32.vlgmr.msra.gmra.mrb[2].mxu0 %vm176_vm2, %v262_v26 }
 0x2cc   :  { %v343_v28 = vpop.f32.mrb[2].mxu0 }
 0x2cd   :  { %v344_v29 = vadd.f32 %v377_v27, %v343_v28  ;;  %v418_v30 = vpop.f32.mrb[3].mxu0 }
 0x2cf   :  { %348 = vst.msk [vmem:[#allocation8] sm:$0x3] %vm347_vm5, %v344_v29 }
 0x2d0   :  { %521 = shalt.err (!%p518_p0)
}
 0x2d1   :  { %s522_s23 = scalar_lea.hbm %s679_s7, 32 }
 0x2d2   :  { %p523_p1 = scmp.ne.s32.totalorder %s679_s7, %s522_s23  ;;  %p526_p2 = scmp.lt.u32.totalorder %s522_s23, %s679_s7 }
 0x2d4   :  { %p528_p3 = pnand %p526_p2, %p523_p1 }
 0x2d6   :  { %531 = shalt.err (!%p528_p3)
}
 0x2d7   :  { %358 = dma.vmem_to_hbm [thread:$0]  %s356_s21, 32, %s679_s7, [#allocation4]  }
 0x2d8   :  { %536 = dma.done.wait [#allocation4], 32  }
 0x2d9   :  { %537 = vsyncadd [#allocation4], 4294967264 }
 0x2da   :  { %362 = vsyncpa [#allocation3], 1 }
 0x2db   :  { %363 = vsyncpa [#allocation6], 1 }
 0x2dc   :  { %364 = vsyncpa [#allocation4], 1 }

</bundles_post_ra>
